<compile_context>
chip_gen: v7x
topology: tpu7x:2x2x1
jax: 0.10.0
libtpu: 0.0.40
codegen_flags: <defaults>
</compile_context>

<pallas_src>
import functools

import jax
import jax.numpy as jnp
from jax import lax
from jax.experimental import pallas as pl
from jax.experimental.pallas import tpu as pltpu


# ---------------------------------------------------------------------------
# small host-side helpers
# ---------------------------------------------------------------------------
def _round_up(x, m):
    return ((x + m - 1) // m) * m


def _largest_divisor(n, cap):
    for d in range(min(n, cap), 0, -1):
        if n % d == 0:
            return d
    return 1


def _pick_depth_tile(d, bytes_per_depth, budget=2 * 1024 * 1024):
    """Largest depth tile whose f32 output block stays within `budget`, capped so
    that there are at least two depth tiles (keeps the pipeline + the cross-tile
    statistics path exercised).  For v7x (64 MiB VMEM) keep the budget modest."""
    cap = max(1, d // 2)
    best = 1
    for td in range(1, cap + 1):
        if d % td == 0 and td * bytes_per_depth <= budget:
            best = td
    return best


# ---------------------------------------------------------------------------
# Pallas kernels
# ---------------------------------------------------------------------------
def _upsample_matmul_kernel(a_ref, b_ref, o_ref):
    # ConvTranspose3d with kernel == stride: output s^3 blocks never overlap, so
    # it is a plain row-tiled matmul  [rows, Cin] @ [Cin, s^3*Cskip].
    o_ref[...] = jnp.dot(a_ref[...].astype(jnp.bfloat16), b_ref[...],
                         preferred_element_type=jnp.float32)


def _conv_block_kernel(in_stat_ref, x_ref, w_ref, gb_ref,      # inputs
                       y_ref, stat_ref,                         # outputs
                       zp_ref, sums_ref,                        # scratch
                       *, apply_input_act: bool, eps: float, total_spatial: int):
    """Fused: [optional input affine+ReLU] -> Conv3d(3x3x3, pad=1, bias=False)
    -> single-pass InstanceNorm statistics (folded scale/shift emitted on the
    last spatial tile).  Grid = (N, Dout // TD)."""
    t = pl.program_id(1)
    n_t = pl.num_programs(1)

    D, H, W, Cin = x_ref.shape[1], x_ref.shape[2], x_ref.shape[3], x_ref.shape[4]
    Cp = zp_ref.shape[-1]          # (padded) input-channel width used by the matmuls
    TD = y_ref.shape[1]            # depth tile of the output
    Coutp = y_ref.shape[-1]        # lane-padded output channels

    # ---- stage the zero-padded (and optionally pre-normalized + ReLU'd) input
    #      slab into VMEM once per batch element --------------------------------
    @pl.when(t == 0)
    def _stage():
        zp_ref[...] = jnp.zeros_like(zp_ref)
        if apply_input_act:
            scale = in_stat_ref[0, 0:1, :]          # (1, Cp)
            shift = in_stat_ref[0, 1:2, :]

        def copy_plane(d, carry):
            xs = x_ref[0, d].astype(jnp.float32)    # (H, W, Cin)
            if apply_input_act:
                # previous conv-block's InstanceNorm (folded) + ReLU
                xs = jnp.maximum(xs * scale + shift, 0.0)
            zp_ref[d + 1, 1:1 + H, 1:1 + W, 0:Cin] = xs.astype(zp_ref.dtype)
            return carry

        lax.fori_loop(0, D, copy_plane, None)
        sums_ref[...] = jnp.zeros_like(sums_ref)

    # ---- 3x3x3 convolution for this depth tile: 27 shifted-slice matmuls ------
    d0 = t * TD
    rows = TD * H * W
    acc = jnp.zeros((rows, Coutp), jnp.float32)
    for kd in range(3):
        for kh in range(3):
            for kw in range(3):
                sl = zp_ref[pl.ds(d0 + kd, TD), kh:kh + H, kw:kw + W, :]
                a = sl.reshape(rows, Cp)                       # bf16
                acc = acc + jnp.dot(a, w_ref[kd, kh, kw],
                                    preferred_element_type=jnp.float32)

    # raw (pre-normalization) conv output for this tile
    y_ref[0] = acc.reshape(TD, H, W, Coutp).astype(y_ref.dtype)

    # ---- accumulate per-channel sum / sum-of-squares for the instance norm ----
    sums_ref[0:1, :] += jnp.sum(acc, axis=0, keepdims=True)
    sums_ref[1:2, :] += jnp.sum(acc * acc, axis=0, keepdims=True)

    # ---- last spatial tile: finalize folded (scale, shift) --------------------
    @pl.when(t == n_t - 1)
    def _finalize():
        inv = 1.0 / float(total_spatial)
        mean = sums_ref[0:1, :] * inv
        var = sums_ref[1:2, :] * inv - mean * mean     # biased variance (PyTorch)
        rstd = jax.lax.rsqrt(var + eps)
        gamma = gb_ref[0:1, :]
        beta = gb_ref[1:2, :]
        scale = gamma * rstd
        stat_ref[0, 0:1, :] = scale
        stat_ref[0, 1:2, :] = beta - mean * scale


def _norm_act_kernel(y_ref, stat_ref, o_ref):
    # Apply the folded InstanceNorm (scale, shift) + ReLU to a depth tile.
    scale = stat_ref[0, 0:1, :]
    shift = stat_ref[0, 1:2, :]
    o_ref[0] = jnp.maximum(y_ref[0] * scale + shift, 0.0).astype(o_ref.dtype)


# ---------------------------------------------------------------------------
# wrappers
# ---------------------------------------------------------------------------
def upsample_transposed_conv(x_ndhwc, w_up, *, row_tile=512):
    """ConvTranspose3d(in, skip, kernel_size=s, stride=s, bias=False)."""
    N, D, H, W, Cin = x_ndhwc.shape
    _, s0, s1, s2, Cs = w_up.shape
    rows = N * D * H * W
    a = x_ndhwc.reshape(rows, Cin)
    b = w_up.reshape(Cin, s0 * s1 * s2 * Cs).astype(jnp.bfloat16)
    tm = _largest_divisor(rows, row_tile)

    out = pl.pallas_call(
        _upsample_matmul_kernel,
        out_shape=jax.ShapeDtypeStruct((rows, b.shape[1]), jnp.float32),
        grid=(rows // tm,),
        in_specs=[pl.BlockSpec((tm, Cin), lambda i: (i, 0)),
                  pl.BlockSpec((Cin, b.shape[1]), lambda i: (0, 0))],
        out_specs=pl.BlockSpec((tm, b.shape[1]), lambda i: (i, 0)),
        compiler_params=pltpu.CompilerParams(
            dimension_semantics=("parallel",)),
    )(a, b)

    # TODO(synk): the s^3-block interleave below is left to XLA; writing the
    # interleaved NDHWC layout directly from the kernel needs strided sublane
    # stores (or merged transposed-conv weights) and is not done here.
    out = out.reshape(N, D, H, W, s0, s1, s2, Cs)
    out = out.transpose(0, 1, 4, 2, 5, 3, 6, 7)
    return out.reshape(N, D * s0, H * s1, W * s2, Cs)


def conv_instance_norm(x_ndhwc, w, gamma, beta, *, in_stat=None, eps=1e-5,
                       lane=128):
    """Conv3d(k=3, s=1, p=1, bias=False) with fused input activation and
    single-pass InstanceNorm statistics.

    Returns (raw_conv_output_padded, stat) where stat[n] = [scale; shift] such
    that InstanceNorm(y)*gamma+beta == y*scale + shift.  The normalization is
    NOT applied to the returned output; the consumer folds it in (next conv's
    input staging, or `apply_instance_norm_relu` for the last block)."""
    N, D, H, W, Cin = x_ndhwc.shape
    K = w.shape[0]
    Cw_in = w.shape[3]
    Cout = w.shape[-1]
    assert Cw_in <= Cin, (Cw_in, Cin)

    Cp = _round_up(Cin, 8)          # contraction width (input channels)
    Coutp = _round_up(Cout, lane)   # lane-dense output channels

    # Host-side (tiny) weight / affine padding + bf16 cast.
    wp = jnp.zeros((K, K, K, Cp, Coutp), jnp.float32)
    wp = wp.at[..., :Cw_in, :Cout].set(w).astype(jnp.bfloat16)
    gb = jnp.zeros((2, Coutp), jnp.float32)
    gb = gb.at[0, :Cout].set(gamma).at[1, :Cout].set(beta)

    if in_stat is None:
        stat_in = jnp.zeros((1, 2, Cp), jnp.float32)   # unused (apply_act=False)
        stat_map = lambda n, t: (0, 0, 0)
        apply_act = False
    else:
        assert in_stat.shape == (N, 2, Cp), (in_stat.shape, (N, 2, Cp))
        stat_in = in_stat
        stat_map = lambda n, t: (n, 0, 0)
        apply_act = True

    TD = _pick_depth_tile(D, H * W * Coutp * 4)
    kernel = functools.partial(_conv_block_kernel, apply_input_act=apply_act,
                               eps=eps, total_spatial=D * H * W)

    # NOTE: the whole per-batch-element input slab is held in VMEM (fetched once
    # per n since its block index is constant over the depth-tile axis).  For
    # very large volumes this should become a halo'd manual-DMA depth slab, and
    # vmem_limit_bytes should be raised (v6e) / budgeted for 64 MiB (v7x).
    y_raw, stat = pl.pallas_call(
        kernel,
        out_shape=(jax.ShapeDtypeStruct((N, D, H, W, Coutp), jnp.float32),
                   jax.ShapeDtypeStruct((N, 2, Coutp), jnp.float32)),
        grid=(N, D // TD),
        in_specs=[
            pl.BlockSpec((1, 2, Cp), stat_map),
            pl.BlockSpec((1, D, H, W, Cin), lambda n, t: (n, 0, 0, 0, 0)),
            pl.BlockSpec((K, K, K, Cp, Coutp), lambda n, t: (0, 0, 0, 0, 0)),
            pl.BlockSpec((2, Coutp), lambda n, t: (0, 0)),
        ],
        out_specs=(
            pl.BlockSpec((1, TD, H, W, Coutp), lambda n, t: (n, t, 0, 0, 0)),
            pl.BlockSpec((1, 2, Coutp), lambda n, t: (n, 0, 0)),
        ),
        scratch_shapes=[
            pltpu.VMEM((D + 2, H + 2, W + 2, Cp), jnp.bfloat16),   # padded slab
            pltpu.VMEM((2, Coutp), jnp.float32),                   # sum / sumsq
        ],
        compiler_params=pltpu.CompilerParams(
            dimension_semantics=("parallel", "arbitrary")),
    )(stat_in, x_ndhwc, wp, gb)
    return y_raw, stat


def apply_instance_norm_relu(y_raw, stat):
    """Final InstanceNorm (folded scale/shift) + ReLU, depth-tiled."""
    N, D, H, W, C = y_raw.shape
    TD = _pick_depth_tile(D, H * W * C * 4)
    return pl.pallas_call(
        _norm_act_kernel,
        out_shape=jax.ShapeDtypeStruct((N, D, H, W, C), jnp.float32),
        grid=(N, D // TD),
        in_specs=[pl.BlockSpec((1, TD, H, W, C), lambda n, t: (n, t, 0, 0, 0)),
                  pl.BlockSpec((1, 2, C), lambda n, t: (n, 0, 0))],
        out_specs=pl.BlockSpec((1, TD, H, W, C), lambda n, t: (n, t, 0, 0, 0)),
        compiler_params=pltpu.CompilerParams(
            dimension_semantics=("parallel", "parallel")),
    )(y_raw, stat)


def decoder_block_forward(encoder_features_ncdhw, x_ncdhw, params):
    """DecoderBlock.forward(encoder_features, x) -- inputs/outputs are NCDHW."""
    enc = jnp.transpose(encoder_features_ncdhw, (0, 2, 3, 4, 1))   # -> NDHWC
    x = jnp.transpose(x_ncdhw, (0, 2, 3, 4, 1))                    # -> NDHWC
    out_channels = params['w1'].shape[-1]

    up = upsample_transposed_conv(x, params['w_up'])
    # torch.cat([encoder_features, upsample(x)], dim=1) == channel concat
    cat = jnp.concatenate([enc, up], axis=-1)

    # ConvBlock 1: Conv3d -> InstanceNorm3d -> Dropout3d(0.5) -> ReLU
    # TODO(synk): Dropout3d is treated as identity (eval mode); training-mode
    # stochastic channel dropout is not reproduced.
    y1_raw, stat1 = conv_instance_norm(cat, params['w1'], params['g1'],
                                       params['b1'])

    # ConvBlock 2: Conv3d -> InstanceNorm3d -> ReLU.  Block 1's normalization +
    # ReLU are folded into this kernel's input staging (scale/shift from stat1),
    # so y1 only makes one raw round trip through HBM.
    y2_raw, stat2 = conv_instance_norm(y1_raw, params['w2'], params['g2'],
                                       params['b2'], in_stat=stat1)

    out = apply_instance_norm_relu(y2_raw, stat2)[..., :out_channels]
    return jnp.transpose(out, (0, 4, 1, 2, 3))                     # -> NCDHW


# ---------------------------------------------------------------------------
# Pure-JAX reference (mirrors the kernel's bf16-matmul / f32-accumulate precision)
# ---------------------------------------------------------------------------
def reference_forward(encoder_features_ncdhw, x_ncdhw, params):
    enc = jnp.transpose(encoder_features_ncdhw, (0, 2, 3, 4, 1))
    x = jnp.transpose(x_ncdhw, (0, 2, 3, 4, 1))
    N, D, H, W, _ = x.shape
    s = params['w_up'].shape[1]
    Cs = params['w_up'].shape[-1]

    up = jnp.einsum('ndhwc,cpqro->ndhwpqro',
                    x.astype(jnp.bfloat16),
                    params['w_up'].astype(jnp.bfloat16),
                    preferred_element_type=jnp.float32)
    up = up.transpose(0, 1, 4, 2, 5, 3, 6, 7).reshape(N, D * s, H * s, W * s, Cs)
    cat = jnp.concatenate([enc, up], axis=-1)

    def block(z, w, g, b):
        y = lax.conv_general_dilated(
            z.astype(jnp.bfloat16), w.astype(jnp.bfloat16),
            (1, 1, 1), [(1, 1)] * 3,
            dimension_numbers=('NDHWC', 'DHWIO', 'NDHWC'),
            preferred_element_type=jnp.float32)
        m = y.mean(axis=(1, 2, 3), keepdims=True)
        v = ((y - m) ** 2).mean(axis=(1, 2, 3), keepdims=True)
        return jnp.maximum((y - m) * jax.lax.rsqrt(v + 1e-5) * g + b, 0.0)

    y1 = block(cat, params['w1'], params['g1'], params['b1'])
    y2 = block(y1, params['w2'], params['g2'], params['b2'])
    return jnp.transpose(y2, (0, 4, 1, 2, 3))


# ---------------------------------------------------------------------------
if __name__ == "__main__":
    key = jax.random.PRNGKey(0)
    N = 2
    in_channels = 8        # channels of decoder input x
    skip_channels = 4      # channels of the encoder skip features
    out_channels = 4
    s = 2                  # upsample_stride
    K = 3                  # conv_kernel_size (padding_width = 1)
    D = H = W = 4          # spatial size of x; encoder features are 2x larger

    ks = jax.random.split(key, 9)
    x = jax.random.normal(ks[0], (N, in_channels, D, H, W), jnp.float32)
    enc = jax.random.normal(ks[1], (N, skip_channels, D * s, H * s, W * s),
                            jnp.float32)

    c1_in = skip_channels + skip_channels   # concat(skip, upsample output)
    params = dict(
        # ConvTranspose3d weight: [Cin, s, s, s, Cout_skip]
        w_up=0.2 * jax.random.normal(ks[2], (in_channels, s, s, s, skip_channels),
                                     jnp.float32),
        # Conv3d weights: [kD, kH, kW, Cin, Cout]
        w1=0.2 * jax.random.normal(ks[3], (K, K, K, c1_in, out_channels),
                                   jnp.float32),
        g1=1.0 + 0.1 * jax.random.normal(ks[4], (out_channels,), jnp.float32),
        b1=0.1 * jax.random.normal(ks[5], (out_channels,), jnp.float32),
        w2=0.2 * jax.random.normal(ks[6], (K, K, K, out_channels, out_channels),
                                   jnp.float32),
        g2=1.0 + 0.1 * jax.random.normal(ks[7], (out_channels,), jnp.float32),
        b2=0.1 * jax.random.normal(ks[8], (out_channels,), jnp.float32),
    )

    out = decoder_block_forward(enc, x, params)
    out = jax.block_until_ready(out)
    assert out.shape == (N, out_channels, D * s, H * s, W * s), out.shape

    ref = jax.block_until_ready(reference_forward(enc, x, params))
    assert bool(jnp.all(jnp.isfinite(out)))
    assert bool(jnp.allclose(out, ref, atol=2e-2, rtol=2e-2)), \
        float(jnp.max(jnp.abs(out - ref)))

    print("KERNEL_OK")
</pallas_src>

<mosaic_0001>
module attributes {stable_mosaic.version = 11 : i64} {
  func.func @_upsample_matmul_kernel(%arg0: i32, %arg1: memref<128x8xf32, #tpu.memory_space<vmem>>, %arg2: memref<8x32xbf16, #tpu.memory_space<vmem>>, %arg3: memref<128x32xf32, #tpu.memory_space<vmem>>) attributes {dimension_semantics = [#tpu.dimension_semantics<parallel>], iteration_bounds = array<i64: 1>, scalar_prefetch = 0 : i64, scratch_operands = 0 : i64, tpu.core_type = #tpu.core_type<tc>, window_params = [{transform_indices = @transform_0, window_bounds = array<i64: 128, 8>}, {pipeline_mode = #tpu.pipeline_mode<synchronous>, transform_indices = @transform_1, window_bounds = array<i64: 8, 32>}, {transform_indices = @transform_2, window_bounds = array<i64: 128, 32>}]} {
    %c0 = arith.constant 0 : index
    %c0_0 = arith.constant 0 : index
    %0 = vector.load %arg1[%c0, %c0_0] : memref<128x8xf32, #tpu.memory_space<vmem>>, vector<128x8xf32>
    %1 = arith.truncf %0 : vector<128x8xf32> to vector<128x8xbf16>
    %c0_1 = arith.constant 0 : index
    %c0_2 = arith.constant 0 : index
    %2 = vector.load %arg2[%c0_1, %c0_2] : memref<8x32xbf16, #tpu.memory_space<vmem>>, vector<8x32xbf16>
    %cst = arith.constant dense<0.000000e+00> : vector<128x32xf32>
    %3 = tpu.matmul %1, %2, %cst {dimension_numbers = #tpu.dot_dimension_numbers<[1], [0], [0], [1], [0, 0, 1, 1], [], []>} : vector<128x8xbf16>, vector<8x32xbf16>, vector<128x32xf32> -> vector<128x32xf32>
    %c0_3 = arith.constant 0 : index
    %c0_4 = arith.constant 0 : index
    %4 = vector.load %arg3[%c0_3, %c0_4] : memref<128x32xf32, #tpu.memory_space<vmem>>, vector<128x32xf32>
    tpu.vector_store %arg3[%c0_3, %c0_4], %3 {strides = array<i32>} : memref<128x32xf32, #tpu.memory_space<vmem>>, vector<128x32xf32>,
    return
  }
  func.func @transform_0(%arg0: i32) -> (i32, i32) {
    %c0_i32 = arith.constant 0 : i32
    %c0_i32_0 = arith.constant 0 : i32
    return %arg0, %c0_i32 : i32, i32
  }
  func.func @transform_1(%arg0: i32) -> (i32, i32) {
    %c0_i32 = arith.constant 0 : i32
    %c0_i32_0 = arith.constant 0 : i32
    %c0_i32_1 = arith.constant 0 : i32
    return %c0_i32, %c0_i32_0 : i32, i32
  }
  func.func @transform_2(%arg0: i32) -> (i32, i32) {
    %c0_i32 = arith.constant 0 : i32
    %c0_i32_0 = arith.constant 0 : i32
    return %arg0, %c0_i32 : i32, i32
  }
}

</mosaic_0001>

<bundles_post_ra>
// kernel: tpu_custom_call.1
= control target key start
LH: loop header
LB: loop body
LE: loop exit
PB: predicated region body
PF: predicated region fallthrough
CT: control target
= control target key end

     0   :  { %vm62_vm0 = vcmask 1043456   ;;  %vm37_vm1 = vcmask 64512   ;;  %vm163_vm2 = vcmask 261120   ;;  %s361_s1 = inlined_call_operand.vmem [shape: bf16[8,32], index: 1, kind: input, shape index: {}]   ;;  %s362_s0 = inlined_call_operand.vmem [shape: f32[128,8], index: 0, kind: input, shape index: {}]   ;;  %s363_s2 = inlined_call_operand.vmem [shape: f32[128,32], index: 2, kind: output, shape index: {}]  }
   0x1   :  { %v36_v0 = vld [vmem:[%s361_s1] sm:$0xf]  ;;  %v13_v2 = vld [vmem:[%s362_s0 + $0x8] sm:$0xff]  ;;  %v14_v7 = vld [vmem:[%s362_s0 + $0x10] sm:$0xff] }
   0x2   :  { %v12_v1 = vld [vmem:[%s362_s0] sm:$0xff]  ;;  %221 = vmatprep.subr.msk.bf16.mxu0 %vm62_vm0, %v36_v0  ;;  %222 = vmatprep.subr.msk.bf16.mxu1 %vm62_vm0, %v36_v0  ;;  %v64_v3 = vsel %vm62_vm0, %v36_v0, 0  ;;  %v21_v6 = vld [vmem:[%s362_s0 + $0x48] sm:$0xff]  ;;  %v15_v9 = vld [vmem:[%s362_s0 + $0x18] sm:$0xff] }
   0x3   :  { %v28_v4 = vpack.c.bf16 %v13_v2, %v12_v1  ;;  %v20_v5 = vld [vmem:[%s362_s0 + $0x40] sm:$0xff]  ;;  %202 = vmatpush3.bf16.msra.mxu0 %v64_v3  ;;  %220 = vmatpush3.bf16.msra.mxu1 %v64_v3  ;;  %v22_v10 = vld [vmem:[%s362_s0 + $0x50] sm:$0xff]  ;;  %v23_v11 = vld [vmem:[%s362_s0 + $0x58] sm:$0xff]  ;;  %v29_v12 = vpack.c.bf16 %v15_v9, %v14_v7 }
   0x4   :  { %v32_v8 = vpack.c.bf16 %v21_v6, %v20_v5  ;;  %v33_v13 = vpack.c.bf16 %v23_v11, %v22_v10  ;;  %v16_v14 = vld [vmem:[%s362_s0 + $0x20] sm:$0xff]  ;;  %v17_v15 = vld [vmem:[%s362_s0 + $0x28] sm:$0xff]  ;;  %v18_v20 = vld [vmem:[%s362_s0 + $0x30] sm:$0xff] }
   0x5   :  { %203 = vmatprep.mubr.msk.bf16.mxu0 %vm37_vm1, %v28_v4  ;;  %v24_v16 = vld [vmem:[%s362_s0 + $0x60] sm:$0xff]  ;;  %v30_v17 = vpack.c.bf16 %v17_v15, %v16_v14  ;;  %v25_v18 = vld [vmem:[%s362_s0 + $0x68] sm:$0xff]  ;;  %v19_v21 = vld [vmem:[%s362_s0 + $0x38] sm:$0xff] }
   0x6   :  { %211 = vmatprep.mubr.msk.bf16.mxu1 %vm37_vm1, %v32_v8  ;;  %204 = vmatmul.mubr.msk.bf16.vlgmr.msra.gmra.mrb[0].mxu0 %vm37_vm1, %v29_v12  ;;  %v34_v19 = vpack.c.bf16 %v25_v18, %v24_v16  ;;  %v26_v22 = vld [vmem:[%s362_s0 + $0x70] sm:$0xff]  ;;  %v27_v23 = vld [vmem:[%s362_s0 + $0x78] sm:$0xff]  ;;  %v31_v24 = vpack.c.bf16 %v19_v21, %v18_v20 }
   0x7   :  { %212 = vmatmul.mubr.msk.bf16.vlgmr.msra.gmra.mrb[0].mxu1 %vm37_vm1, %v33_v13  ;;  %207 = vmatprep.mubr.msk.bf16.mxu0 %vm37_vm1, %v30_v17  ;;  %v35_v25 = vpack.c.bf16 %v27_v23, %v26_v22 }
   0x8   :  { %215 = vmatprep.mubr.msk.bf16.mxu1 %vm37_vm1, %v34_v19 }
   0xe   :  { %208 = vmatmul.mubr.msk.bf16.gmra.mrb[4].mxu0 %vm37_vm1, %v31_v24 }
   0xf   :  { %216 = vmatmul.mubr.msk.bf16.gmra.mrb[4].mxu1 %vm37_vm1, %v35_v25 }
  0xd9   :  { %v205_v26 = vpop.f32.mrb[0].mxu0 }
  0xda   :  { %v213_v27 = vpop.f32.mrb[0].mxu1  ;;  %166 = vst.msk [vmem:[%s363_s2 + $0x10] sm:$0xff] %vm163_vm2, %v205_v26  ;;  %v100_v28 = vpop.f32.mrb[1].mxu0 }
  0xdb   :  { %174 = vst.msk [vmem:[%s363_s2 + $0x50] sm:$0xff] %vm163_vm2, %v213_v27  ;;  %v132_v29 = vpop.f32.mrb[1].mxu1  ;;  %164 = vst.msk [vmem:[%s363_s2] sm:$0xff] %vm163_vm2, %v100_v28  ;;  %v206_v30 = vpop.f32.mrb[2].mxu0 }
  0xdc   :  { %172 = vst.msk [vmem:[%s363_s2 + $0x40] sm:$0xff] %vm163_vm2, %v132_v29  ;;  %v214_v31 = vpop.f32.mrb[2].mxu1  ;;  %167 = vst.msk [vmem:[%s363_s2 + $0x18] sm:$0xff] %vm163_vm2, %v206_v30  ;;  %v103_v32 = vpop.f32.mrb[3].mxu0 }
  0xdd   :  { %175 = vst.msk [vmem:[%s363_s2 + $0x58] sm:$0xff] %vm163_vm2, %v214_v31  ;;  %v135_v33 = vpop.f32.mrb[3].mxu1  ;;  %165 = vst.msk [vmem:[%s363_s2 + $0x8] sm:$0xff] %vm163_vm2, %v103_v32 }
  0xde   :  { %173 = vst.msk [vmem:[%s363_s2 + $0x48] sm:$0xff] %vm163_vm2, %v135_v33 }
  0xe1   :  { %v209_v34 = vpop.f32.mrb[4].mxu0 }
  0xe2   :  { %v217_v35 = vpop.f32.mrb[4].mxu1  ;;  %170 = vst.msk [vmem:[%s363_s2 + $0x30] sm:$0xff] %vm163_vm2, %v209_v34  ;;  %v116_v36 = vpop.f32.mrb[5].mxu0 }
  0xe3   :  { %178 = vst.msk [vmem:[%s363_s2 + $0x70] sm:$0xff] %vm163_vm2, %v217_v35  ;;  %v148_v37 = vpop.f32.mrb[5].mxu1  ;;  %168 = vst.msk [vmem:[%s363_s2 + $0x20] sm:$0xff] %vm163_vm2, %v116_v36  ;;  %v210_v38 = vpop.f32.mrb[6].mxu0 }
  0xe4   :  { %176 = vst.msk [vmem:[%s363_s2 + $0x60] sm:$0xff] %vm163_vm2, %v148_v37  ;;  %v218_v39 = vpop.f32.mrb[6].mxu1  ;;  %171 = vst.msk [vmem:[%s363_s2 + $0x38] sm:$0xff] %vm163_vm2, %v210_v38  ;;  %v119_v40 = vpop.f32.mrb[7].mxu0 }
  0xe5   :  { %179 = vst.msk [vmem:[%s363_s2 + $0x78] sm:$0xff] %vm163_vm2, %v218_v39  ;;  %v151_v41 = vpop.f32.mrb[7].mxu1  ;;  %169 = vst.msk [vmem:[%s363_s2 + $0x28] sm:$0xff] %vm163_vm2, %v119_v40 }
  0xe6   :  { %177 = vst.msk [vmem:[%s363_s2 + $0x68] sm:$0xff] %vm163_vm2, %v151_v41 }

</bundles_post_ra>
